<compile_context>
chip_gen: v5e
topology: v5e:2x2
jax: 0.10.0
libtpu: 0.0.40
codegen_flags: <defaults>
</compile_context>

<pallas_src>
import functools
from math import comb

import jax
import jax.numpy as jnp
from jax.experimental import pallas as pl
from jax.experimental.pallas import tpu as pltpu


_TILE_N_MAX = 1024   # rows per batch tile (multiple of 8)
_TILE_D_MAX = 512    # features per tile   (multiple of 128)


def _power_sums_kernel(x1_ref, x2_ref, s1_ref, s2_ref, *, n_moments, tile_n,
                       n1, n2, nb1, nb2, nb_grid):
    """Accumulate raw per-feature power sums sum_n x[n, d]^k, k=1..n_moments."""
    n = pl.program_id(1)            # batch-block index (reduction axis)

    @pl.when(n == 0)
    def _init():
        s1_ref[...] = jnp.zeros_like(s1_ref)
        s2_ref[...] = jnp.zeros_like(s2_ref)

    row = jax.lax.broadcasted_iota(jnp.int32, (tile_n, 1), 0)

    def accum(x_ref, s_ref, n_rows, n_blocks):
        x = x_ref[...].astype(jnp.float32)
        # Mask padded / repeated rows: ragged last batch block, or grid longer
        # than this array's batch because the other input has more rows
        # (its index_map is clamped, so the repeated block must contribute 0).
        if (n_blocks * tile_n != n_rows) or (n_blocks < nb_grid):
            start = jnp.minimum(n, n_blocks - 1) * tile_n
            valid = jnp.logical_and(n < n_blocks, (start + row) < n_rows)
            x = jnp.where(valid, x, 0.0)
        p = x                                           # running power x^k
        sums = [jnp.sum(p, axis=0, keepdims=True)]      # k = 1
        for _ in range(n_moments - 1):
            p = p * x                                   # 1 mul / elem / moment
            sums.append(jnp.sum(p, axis=0, keepdims=True))
        s_ref[...] += jnp.concatenate(sums, axis=0)     # (n_moments, tile_d)

    accum(x1_ref, s1_ref, n1, nb1)
    accum(x2_ref, s2_ref, n2, nb2)


def _pick_tiles(n1, n2, d):
    if n1 == n2:
        tile_n = n1 if n1 <= _TILE_N_MAX else _TILE_N_MAX
    else:
        # Shared batch tile must be a multiple of 8 and <= both batch sizes.
        tile_n = min(_TILE_N_MAX, 8 * (min(n1, n2) // 8))
    tile_d = d if d <= _TILE_D_MAX else _TILE_D_MAX
    return tile_n, tile_d


def _raw_power_sums(x1, x2, n_moments):
    n1, d = x1.shape
    n2, _ = x2.shape
    tile_n, tile_d = _pick_tiles(n1, n2, d)
    assert tile_n >= 1
    nb1 = pl.cdiv(n1, tile_n)
    nb2 = pl.cdiv(n2, tile_n)
    nb_grid = max(nb1, nb2)
    nd = pl.cdiv(d, tile_d)

    def in_spec(nb):
        if nb == nb_grid:
            return pl.BlockSpec((tile_n, tile_d), lambda di, ni: (ni, di))
        last = nb - 1   # clamp: extra grid steps re-read block `last`, masked out
        return pl.BlockSpec((tile_n, tile_d),
                            lambda di, ni: (jnp.minimum(ni, last), di))

    out_spec = pl.BlockSpec((n_moments, tile_d), lambda di, ni: (0, di))

    kernel = functools.partial(
        _power_sums_kernel, n_moments=n_moments, tile_n=tile_n,
        n1=n1, n2=n2, nb1=nb1, nb2=nb2, nb_grid=nb_grid)

    s1, s2 = pl.pallas_call(
        kernel,
        grid=(nd, nb_grid),
        in_specs=[in_spec(nb1), in_spec(nb2)],
        out_specs=[out_spec, out_spec],
        out_shape=[jax.ShapeDtypeStruct((n_moments, d), jnp.float32)] * 2,
        compiler_params=pltpu.CompilerParams(
            dimension_semantics=("parallel", "arbitrary"),
            # Plenty of headroom for double-buffered tiles; stays well within
            # v7x's 64 MiB physical VMEM, raises v5e's 16 MiB default.
            vmem_limit_bytes=48 * 1024 * 1024),
    )(x1, x2)
    return s1, s2


def _central_moment(s, n_rows, k):
    """E[(x - mu)^k] from raw power sums via the binomial identity (exact algebra)."""
    mu = s[0] / n_rows
    neg_mu = -mu
    acc = n_rows * neg_mu ** k                    # j = 0 term (S_0 = n_rows)
    for j in range(1, k + 1):
        acc = acc + comb(k, j) * s[j - 1] * neg_mu ** (k - j)
    return acc / n_rows


def _finalize(s1, s2, n1, n2, n_moments):
    mu1 = s1[0] / n1
    mu2 = s2[0] / n2
    dmu = mu1 - mu2
    first = jnp.sqrt(jnp.sum(dmu * dmu))
    # PyTorch quirk: only isinf is filtered for the first moment.
    total = jnp.where(jnp.isinf(first), 0.0, first)
    for k in range(2, n_moments + 1):
        dm = _central_moment(s1, n1, k) - _central_moment(s2, n2, k)
        diff = jnp.sqrt(jnp.sum(dm * dm))
        total = total + jnp.where(jnp.isinf(diff) | jnp.isnan(diff), 0.0, diff)
    return total


def cmd_loss_ref(x1, x2, n_moments=3):
    """Pure-JAX two-pass reference mirroring F_cmd_loss."""
    x1 = x1.astype(jnp.float32)
    x2 = x2.astype(jnp.float32)
    mx1 = x1.mean(0)
    mx2 = x2.mean(0)
    cx1 = x1 - mx1
    cx2 = x2 - mx2
    first = jnp.sqrt(jnp.sum((mx1 - mx2) ** 2))
    total = jnp.where(jnp.isinf(first), 0.0, first)
    for k in range(2, n_moments + 1):
        diff = jnp.sqrt(jnp.sum(((cx1 ** k).mean(0) - (cx2 ** k).mean(0)) ** 2))
        total = total + jnp.where(jnp.isinf(diff) | jnp.isnan(diff), 0.0, diff)
    return total


@functools.partial(jax.jit, static_argnames=("n_moments", "use_kernel"))
def cmd_loss(x1, x2, n_moments=3, use_kernel=None):
    """CMD loss between two (N, D) feature batches, computed on TPU via Pallas."""
    assert x1.ndim == 2 and x2.ndim == 2 and x1.shape[1] == x2.shape[1]
    assert n_moments >= 1
    n1 = x1.shape[0]
    n2 = x2.shape[0]
    if use_kernel is None:
        # Launch overhead dwarfs the work below ~256 KiB; let XLA fuse it.
        total_bytes = (x1.size + x2.size) * x1.dtype.itemsize
        use_kernel = total_bytes >= 256 * 1024
    if n1 != n2 and min(n1, n2) < 8:
        # Cannot form a legal shared (multiple-of-8) batch tile; exact fallback.
        use_kernel = False
    if not use_kernel:
        return cmd_loss_ref(x1, x2, n_moments)
    s1, s2 = _raw_power_sums(x1, x2, n_moments)
    return _finalize(s1, s2, n1, n2, n_moments)


if __name__ == "__main__":
    key = jax.random.PRNGKey(0)
    k1, k2, k3, k4 = jax.random.split(key, 4)

    n_moments = 3   # matches CMDLoss(n_moments=3)

    # 1) Small shape consistent with the module (batch=8, hidden=32).
    #    Force the kernel path (auto dispatch would use the fused JAX path).
    x1 = jax.random.normal(k1, (8, 32), dtype=jnp.float32)
    x2 = 0.5 * jax.random.normal(k2, (8, 32), dtype=jnp.float32) + 0.1
    out_small = jax.block_until_ready(
        cmd_loss(x1, x2, n_moments=n_moments, use_kernel=True))
    ref_small = cmd_loss_ref(x1, x2, n_moments)
    assert jnp.allclose(out_small, ref_small, rtol=1e-4, atol=1e-5), (out_small, ref_small)

    # 2) Larger ragged shapes with different batch sizes: exercises batch
    #    tiling, row masking and the clamped index_map.
    y1 = jax.random.normal(k3, (520, 256), dtype=jnp.float32)
    y2 = 0.5 * jax.random.normal(k4, (392, 256), dtype=jnp.float32) + 0.1
    out_big = jax.block_until_ready(
        cmd_loss(y1, y2, n_moments=n_moments, use_kernel=True))
    ref_big = cmd_loss_ref(y1, y2, n_moments)
    assert jnp.allclose(out_big, ref_big, rtol=1e-4, atol=1e-5), (out_big, ref_big)

    # 3) bf16 inputs (halves HBM traffic); accumulation stays f32 in-kernel.
    out_bf16 = jax.block_until_ready(
        cmd_loss(y1.astype(jnp.bfloat16), y2.astype(jnp.bfloat16),
                 n_moments=n_moments, use_kernel=True))
    assert jnp.isfinite(out_bf16) and (jnp.abs(out_bf16 - ref_big) < 0.05 * ref_big + 0.05)

    print("KERNEL_OK")
</pallas_src>

<mosaic_0001>
module attributes {stable_mosaic.version = 11 : i64} {
  func.func @_power_sums_kernel(%arg0: i32, %arg1: i32, %arg2: memref<8x32xf32, #tpu.memory_space<vmem>>, %arg3: memref<8x32xf32, #tpu.memory_space<vmem>>, %arg4: memref<3x32xf32, #tpu.memory_space<vmem>>, %arg5: memref<3x32xf32, #tpu.memory_space<vmem>>) attributes {dimension_semantics = [#tpu.dimension_semantics<parallel>, #tpu.dimension_semantics<arbitrary>], iteration_bounds = array<i64: 1, 1>, scalar_prefetch = 0 : i64, scratch_operands = 0 : i64, tpu.core_type = #tpu.core_type<tc>, window_params = [{transform_indices = @transform_0, window_bounds = array<i64: 8, 32>}, {transform_indices = @transform_1, window_bounds = array<i64: 8, 32>}, {transform_indices = @transform_2, window_bounds = array<i64: 3, 32>}, {transform_indices = @transform_3, window_bounds = array<i64: 3, 32>}]} {
    %c0_i32 = arith.constant 0 : i32
    %0 = arith.cmpi eq, %arg1, %c0_i32 : i32
    %1 = arith.extui %0 : i1 to i32
    %c0_i32_0 = arith.constant 0 : i32
    %2 = arith.cmpi ne, %1, %c0_i32_0 : i32
    scf.if %2 {
      %cst_17 = arith.constant 0.000000e+00 : f32
      %29 = vector.broadcast %cst_17 : f32 to vector<3x32xf32>
      %c0_18 = arith.constant 0 : index
      %c0_19 = arith.constant 0 : index
      %30 = vector.load %arg4[%c0_18, %c0_19] : memref<3x32xf32, #tpu.memory_space<vmem>>, vector<3x32xf32>
      tpu.vector_store %arg4[%c0_18, %c0_19], %29 {strides = array<i32>} : memref<3x32xf32, #tpu.memory_space<vmem>>, vector<3x32xf32>,
      %cst_20 = arith.constant 0.000000e+00 : f32
      %31 = vector.broadcast %cst_20 : f32 to vector<3x32xf32>
      %c0_21 = arith.constant 0 : index
      %c0_22 = arith.constant 0 : index
      %32 = vector.load %arg5[%c0_21, %c0_22] : memref<3x32xf32, #tpu.memory_space<vmem>>, vector<3x32xf32>
      tpu.vector_store %arg5[%c0_21, %c0_22], %31 {strides = array<i32>} : memref<3x32xf32, #tpu.memory_space<vmem>>, vector<3x32xf32>,
    } else {
    }
    %c0 = arith.constant 0 : index
    %c0_1 = arith.constant 0 : index
    %3 = vector.load %arg2[%c0, %c0_1] : memref<8x32xf32, #tpu.memory_space<vmem>>, vector<8x32xf32>
    %cst = arith.constant dense<0.000000e+00> : vector<32xf32>
    %4 = vector.multi_reduction <add>, %3, %cst [0] : vector<8x32xf32> to vector<32xf32>
    %5 = vector.shape_cast %4 : vector<32xf32> to vector<1x32xf32>
    %6 = arith.mulf %3, %3 : vector<8x32xf32>
    %cst_2 = arith.constant dense<0.000000e+00> : vector<32xf32>
    %7 = vector.multi_reduction <add>, %6, %cst_2 [0] : vector<8x32xf32> to vector<32xf32>
    %8 = vector.shape_cast %7 : vector<32xf32> to vector<1x32xf32>
    %9 = arith.mulf %6, %3 : vector<8x32xf32>
    %cst_3 = arith.constant dense<0.000000e+00> : vector<32xf32>
    %10 = vector.multi_reduction <add>, %9, %cst_3 [0] : vector<8x32xf32> to vector<32xf32>
    %11 = vector.shape_cast %10 : vector<32xf32> to vector<1x32xf32>
    %c0_4 = arith.constant 0 : index
    %c0_5 = arith.constant 0 : index
    %12 = vector.load %arg4[%c0_4, %c0_5] : memref<3x32xf32, #tpu.memory_space<vmem>>, vector<3x32xf32>
    %13 = tpu.concatenate %5, %8, %11 in 0 : vector<1x32xf32>, vector<1x32xf32>, vector<1x32xf32> -> vector<3x32xf32>
    %14 = arith.addf %12, %13 : vector<3x32xf32>
    %c0_6 = arith.constant 0 : index
    %c0_7 = arith.constant 0 : index
    %15 = vector.load %arg4[%c0_6, %c0_7] : memref<3x32xf32, #tpu.memory_space<vmem>>, vector<3x32xf32>
    tpu.vector_store %arg4[%c0_6, %c0_7], %14 {strides = array<i32>} : memref<3x32xf32, #tpu.memory_space<vmem>>, vector<3x32xf32>,
    %c0_8 = arith.constant 0 : index
    %c0_9 = arith.constant 0 : index
    %16 = vector.load %arg3[%c0_8, %c0_9] : memref<8x32xf32, #tpu.memory_space<vmem>>, vector<8x32xf32>
    %cst_10 = arith.constant dense<0.000000e+00> : vector<32xf32>
    %17 = vector.multi_reduction <add>, %16, %cst_10 [0] : vector<8x32xf32> to vector<32xf32>
    %18 = vector.shape_cast %17 : vector<32xf32> to vector<1x32xf32>
    %19 = arith.mulf %16, %16 : vector<8x32xf32>
    %cst_11 = arith.constant dense<0.000000e+00> : vector<32xf32>
    %20 = vector.multi_reduction <add>, %19, %cst_11 [0] : vector<8x32xf32> to vector<32xf32>
    %21 = vector.shape_cast %20 : vector<32xf32> to vector<1x32xf32>
    %22 = arith.mulf %19, %16 : vector<8x32xf32>
    %cst_12 = arith.constant dense<0.000000e+00> : vector<32xf32>
    %23 = vector.multi_reduction <add>, %22, %cst_12 [0] : vector<8x32xf32> to vector<32xf32>
    %24 = vector.shape_cast %23 : vector<32xf32> to vector<1x32xf32>
    %c0_13 = arith.constant 0 : index
    %c0_14 = arith.constant 0 : index
    %25 = vector.load %arg5[%c0_13, %c0_14] : memref<3x32xf32, #tpu.memory_space<vmem>>, vector<3x32xf32>
    %26 = tpu.concatenate %18, %21, %24 in 0 : vector<1x32xf32>, vector<1x32xf32>, vector<1x32xf32> -> vector<3x32xf32>
    %27 = arith.addf %25, %26 : vector<3x32xf32>
    %c0_15 = arith.constant 0 : index
    %c0_16 = arith.constant 0 : index
    %28 = vector.load %arg5[%c0_15, %c0_16] : memref<3x32xf32, #tpu.memory_space<vmem>>, vector<3x32xf32>
    tpu.vector_store %arg5[%c0_15, %c0_16], %27 {strides = array<i32>} : memref<3x32xf32, #tpu.memory_space<vmem>>, vector<3x32xf32>,
    return
  }
  func.func @transform_0(%arg0: i32, %arg1: i32) -> (i32, i32) {
    %c0_i32 = arith.constant 0 : i32
    return %arg1, %arg0 : i32, i32
  }
  func.func @transform_1(%arg0: i32, %arg1: i32) -> (i32, i32) {
    %c0_i32 = arith.constant 0 : i32
    return %arg1, %arg0 : i32, i32
  }
  func.func @transform_2(%arg0: i32, %arg1: i32) -> (i32, i32) {
    %c0_i32 = arith.constant 0 : i32
    %c0_i32_0 = arith.constant 0 : i32
    return %c0_i32, %arg0 : i32, i32
  }
  func.func @transform_3(%arg0: i32, %arg1: i32) -> (i32, i32) {
    %c0_i32 = arith.constant 0 : i32
    %c0_i32_0 = arith.constant 0 : i32
    return %c0_i32, %arg0 : i32, i32
  }
}

</mosaic_0001>

<bundles_post_ra>
// kernel: cmd_loss.1
= control target key start
LH: loop header
LB: loop body
LE: loop exit
PB: predicated region body
PF: predicated region fallthrough
CT: control target
= control target key end

     0   :  { %9 = vsyncpa [#allocation3], 0  ;;  %s232_s0 = inlined_call_operand.hbm [shape: f32[8,32], index: 0, kind: input, shape index: {}]   ;;  %s233_s1 = inlined_call_operand.hbm [shape: f32[8,32], index: 1, kind: input, shape index: {}]   ;;  %s234_s2 = inlined_call_operand.vmem [shape: f32[3,32], index: 2, kind: output, shape index: {0}]   ;;  %s235_s3 = inlined_call_operand.vmem [shape: f32[3,32], index: 3, kind: output, shape index: {1}]  }
   0x1   :  { %s16_s14 = sshll.u32 %s232_s0, 4  ;;  %s17_s14 = int_to_ptr.hbm [resolvable:$true] %s16_s14 }
   0x2   :  { %10 = vsyncpa [#allocation5], 0  ;;  %s175_s15 = smov [#allocation2]   ;;  %s27_s19 = sshll.u32 %s233_s1, 4  ;;  %s28_s19 = int_to_ptr.hbm [resolvable:$true] %s27_s19 }
   0x3   :  { %s18_s16 = sshll.u32 %s175_s15, 4  ;;  %s176_s20 = smov [#allocation4]   ;;  %s19_s16 = int_to_ptr.vmem [resolvable:$true] %s18_s16 }
   0x4   :  { %21 = dma.hbm_to_vmem [thread:$0]  %s17_s14, 128, %s19_s16, [#allocation3]  }
   0x5   :  { %s29_s21 = sshll.u32 %s176_s20, 4  ;;  %s30_s21 = int_to_ptr.vmem [resolvable:$true] %s29_s21 }
   0x6   :  { %32 = dma.hbm_to_vmem [thread:$0]  %s28_s19, 128, %s30_s21, [#allocation5]  }
   0x7   :  { %171 = dma.done.wait [#allocation3], 128  }
   0x8   :  { %172 = vsyncadd [#allocation3], 4294967168 }
   0x9   :  { %173 = dma.done.wait [#allocation5], 128  }
   0xa   :  { %174 = vsyncadd [#allocation5], 4294967168  ;;  %vm45_vm0 = vcmask 256000   ;;  %v177_v0 = vmov 0.0   ;;  %vm49_vm1 = vcmask 261120   ;;  %v48_v1 = vld [vmem:[#allocation2] sm:$0xff] }
   0xb   :  { %46 = vst.msk [vmem:[%s234_s2] sm:$0x7] %vm45_vm0, %v177_v0  ;;  %v81_v2 = vld [vmem:[#allocation4] sm:$0xff]  ;;  %v50_v3 = vsel %vm49_vm1, %v48_v1, 0.0  ;;  %v57_v4 = vmul.f32 %v48_v1, %v48_v1  ;;  %vm74_vm2 = vcmask 1040384   ;;  %vm76_vm3 = vcmask 1041408  }
   0xc   :  { %47 = vst.msk [vmem:[%s235_s3] sm:$0x7] %vm45_vm0, %v177_v0  ;;  %v82_v5 = vsel %vm49_vm1, %v81_v2, 0.0  ;;  %v89_v6 = vmul.f32 %v81_v2, %v81_v2  ;;  %v51_v7 = vrot.slane %v50_v3, 4 }
   0xd   :  { %v83_v8 = vrot.slane %v82_v5, 4  ;;  %v58_v9 = vsel %vm49_vm1, %v57_v4, 0.0  ;;  %v65_v10 = vmul.f32 %v57_v4, %v48_v1 }
   0xe   :  { %v90_v11 = vsel %vm49_vm1, %v89_v6, 0.0  ;;  %v97_v12 = vmul.f32 %v89_v6, %v81_v2  ;;  %v52_v13 = vadd.f32 %v51_v7, %v50_v3  ;;  %v59_v14 = vrot.slane %v58_v9, 4 }
   0xf   :  { %v84_v15 = vadd.f32 %v83_v8, %v82_v5  ;;  %v91_v16 = vrot.slane %v90_v11, 4  ;;  %v66_v17 = vsel %vm49_vm1, %v65_v10, 0.0 }
  0x10   :  { %v98_v18 = vsel %vm49_vm1, %v97_v12, 0.0  ;;  %v53_v19 = vrot.slane %v52_v13, 2  ;;  %v60_v20 = vadd.f32 %v59_v14, %v58_v9  ;;  %v67_v21 = vrot.slane %v66_v17, 4 }
  0x11   :  { %v85_v22 = vrot.slane %v84_v15, 2  ;;  %v92_v23 = vadd.f32 %v91_v16, %v90_v11  ;;  %v99_v24 = vrot.slane %v98_v18, 4 }
  0x12   :  { %v54_v25 = vadd.f32 %v53_v19, %v52_v13  ;;  %v61_v26 = vrot.slane %v60_v20, 2  ;;  %v68_v27 = vadd.f32 %v67_v21, %v66_v17  ;;  %v73_v48 = vld [vmem:[%s234_s2] sm:$0x7] }
  0x13   :  { %v86_v28 = vadd.f32 %v85_v22, %v84_v15  ;;  %v93_v29 = vrot.slane %v92_v23, 2  ;;  %v100_v30 = vadd.f32 %v99_v24, %v98_v18  ;;  %v105_v51 = vld [vmem:[%s235_s3] sm:$0x7] }
  0x14   :  { %v55_v31 = vrot.slane %v54_v25, 1  ;;  %v62_v32 = vadd.f32 %v61_v26, %v60_v20  ;;  %v69_v33 = vrot.slane %v68_v27, 2 }
  0x15   :  { %v87_v34 = vrot.slane %v86_v28, 1  ;;  %v94_v35 = vadd.f32 %v93_v29, %v92_v23  ;;  %v101_v36 = vrot.slane %v100_v30, 2 }
  0x16   :  { %v56_v37 = vadd.f32 %v55_v31, %v54_v25  ;;  %v63_v38 = vrot.slane %v62_v32, 1  ;;  %v70_v39 = vadd.f32 %v69_v33, %v68_v27 }
  0x17   :  { %v88_v40 = vadd.f32 %v87_v34, %v86_v28  ;;  %v95_v41 = vrot.slane %v94_v35, 1  ;;  %v102_v42 = vadd.f32 %v101_v36, %v100_v30 }
  0x18   :  { %v64_v43 = vadd.f32 %v63_v38, %v62_v32  ;;  %v71_v44 = vrot.slane %v70_v39, 1 }
  0x19   :  { %v96_v45 = vadd.f32 %v95_v41, %v94_v35  ;;  %v103_v46 = vrot.slane %v102_v42, 1 }
  0x1a   :  { %v72_v47 = vadd.f32 %v71_v44, %v70_v39  ;;  %v75_v49 = vsel %vm74_vm2, %v56_v37, %v64_v43 }
  0x1b   :  { %v104_v50 = vadd.f32 %v103_v46, %v102_v42  ;;  %v106_v52 = vsel %vm74_vm2, %v88_v40, %v96_v45 }
  0x1c   :  { %v77_v53 = vsel %vm76_vm3, %v75_v49, %v72_v47 }
  0x1d   :  { %v78_v54 = vadd.f32 %v77_v53, %v73_v48  ;;  %v107_v55 = vsel %vm76_vm3, %v106_v52, %v104_v50 }
  0x1e   :  { %v108_v56 = vadd.f32 %v107_v55, %v105_v51 }
  0x1f   :  { %80 = vst.msk [vmem:[%s234_s2] sm:$0x7] %vm45_vm0, %v78_v54 }
  0x20   :  { %109 = vst.msk [vmem:[%s235_s3] sm:$0x7] %vm45_vm0, %v108_v56 }
  0x21   :  { %118 = vsyncpa [#allocation3], 1 }
  0x22   :  { %119 = vsyncpa [#allocation5], 1 }

</bundles_post_ra>
